<compile_context>
chip_gen: v7x
topology: tpu7x:2x2x1
jax: 0.10.0
libtpu: 0.0.40
codegen_flags: <defaults>
</compile_context>

<pallas_src>
import jax
import jax.numpy as jnp
from jax.experimental import pallas as pl
from jax.experimental.pallas import tpu as pltpu


# --------------------------------------------------------------------------- #
# Kernel: one lane-aligned Dout tile of   PKV = tanh(E @ W1 + b1) @ W2 + b2
# --------------------------------------------------------------------------- #
def _prefix_mlp_kernel(e_ref, w1_ref, b1_ref, w2_ref, b2_ref, o_ref):
    # Layer 1 recomputed per tile: a tiny (P, Hp) x (Hp, Hp) MXU matmul + EUP
    # tanh; both hide entirely under the W2 tile DMA of this HBM-bound kernel.
    h = jnp.dot(e_ref[...], w1_ref[...], preferred_element_type=jnp.float32)
    h = jnp.tanh(h + b1_ref[...])                 # bias + tanh stay in f32
    h = h.astype(w2_ref.dtype)                    # tiny (P, Hp) cast; bf16 MXU pass
    # Layer 2: one output-column tile of H @ W2 with f32 accumulation.
    y = jnp.dot(h, w2_ref[...], preferred_element_type=jnp.float32)
    o_ref[...] = (y + b2_ref[...]).astype(o_ref.dtype)


# --------------------------------------------------------------------------- #
# Tiling / VMEM policy
# --------------------------------------------------------------------------- #
def _chip_vmem_bytes():
    try:
        info = pltpu.get_tpu_info()
        v = getattr(info, "vmem_capacity_bytes", None)
        if v:
            return int(v)
    except Exception:
        pass
    return 64 << 20  # conservative default (v7x per-core VMEM)


def _select_tiling(P, Hp, Dout, w_itemsize, out_itemsize, stream_budget_bytes=None):
    """Pick tile_n (always dividing Dout -> no runtime pad/slice) and vmem_limit."""
    phys = _chip_vmem_bytes()
    # Leave headroom below physical VMEM: v7x (64 MiB phys) -> cap 48 MiB;
    # v5e/v6e (128 MiB phys) -> allow up to ~100 MiB.
    limit_cap = (48 << 20) if phys <= (64 << 20) else (100 << 20)
    if stream_budget_bytes is None:
        stream_budget_bytes = min(phys * 2 // 3, limit_cap - (4 << 20))

    p_pad = -(-P // 8) * 8
    # Double-buffered streamed bytes per output column: W2 column + out column + b2.
    per_col = 2 * (Hp * w_itemsize + p_pad * out_itemsize + 8 * 4)
    max_tile = max(128, (stream_budget_bytes // per_col) // 128 * 128)

    if Dout % 128 != 0:
        # Dout = n_layer*2*hidden is normally a multiple of 128; if not, use a
        # single full-width block (block == full dim is always legal) so the
        # forward never pads W2 or slices the output at runtime.
        # TODO(synk): for a huge non-128-multiple Dout, pad W2/b2 once at
        # parameter-init time instead of relying on the full-width block.
        tile_n = Dout
    else:
        if Dout >= 256:
            # Keep grid_n >= 2 so a v7x megacore streams W2 on both TensorCores
            # (one extra ~0.35us grid step on single-TC chips -> negligible).
            max_tile = min(max_tile, (Dout // 2) // 128 * 128)
        units = Dout // 128
        best = 1
        for d in range(1, units + 1):
            if units % d == 0 and d * 128 <= max_tile:
                best = d
        tile_n = best * 128

    grid_n = Dout // tile_n
    nbuf = 2 if grid_n > 1 else 1
    invariant = (p_pad * Hp + Hp * Hp + 8 * Hp) * 4 * 2          # E, W1, b1 (f32)
    streamed = nbuf * tile_n * (Hp * w_itemsize + p_pad * out_itemsize + 8 * 4)
    vmem_limit = int(min(limit_cap, max(4 << 20, invariant + streamed + (2 << 20))))
    return tile_n, grid_n, vmem_limit


# --------------------------------------------------------------------------- #
# Wrappers
# --------------------------------------------------------------------------- #
def prefix_mlp(embedding, w1, b1, w2, b2, *, weights_dtype=None,
               out_dtype=jnp.float32, tile_budget_bytes=None):
    """PKV = tanh(E @ W1 + b1) @ W2 + b2  as one Dout-tiled Pallas kernel.

    embedding: (P, Hp)   w1: (Hp, Hp)   b1: (Hp,)   w2: (Hp, Dout)   b2: (Dout,)
    prefix_tokens == arange(P), so the embedding gather is the identity on the
    table and the MLP runs directly on the embedding weights.

    For best performance store W2 in bf16 at init (halves the dominant HBM
    read).  `weights_dtype` only exists as a convenience cast; casting per call
    costs an extra HBM pass over W2.
    """
    P, Hp = embedding.shape
    K, Dout = w2.shape
    assert K == Hp and w1.shape == (Hp, Hp), (embedding.shape, w1.shape, w2.shape)

    e = embedding.astype(jnp.float32)            # layer-1 / activation path in f32
    w1f = w1.astype(jnp.float32)
    b1f = b1.reshape(1, Hp).astype(jnp.float32)
    w2s = w2.astype(weights_dtype) if weights_dtype is not None else w2
    b2f = b2.reshape(1, Dout).astype(jnp.float32)

    tile_n, grid_n, vmem_limit = _select_tiling(
        P, Hp, Dout,
        jnp.dtype(w2s.dtype).itemsize, jnp.dtype(out_dtype).itemsize,
        stream_budget_bytes=tile_budget_bytes)

    return pl.pallas_call(
        _prefix_mlp_kernel,
        out_shape=jax.ShapeDtypeStruct((P, Dout), out_dtype),
        grid=(grid_n,),
        in_specs=[
            pl.BlockSpec((P, Hp), lambda j: (0, 0)),        # E      (grid-invariant)
            pl.BlockSpec((Hp, Hp), lambda j: (0, 0)),       # W1     (grid-invariant)
            pl.BlockSpec((1, Hp), lambda j: (0, 0)),        # b1     (grid-invariant)
            pl.BlockSpec((Hp, tile_n), lambda j: (0, j)),   # W2 tile stream (rows are
                                                            # tile_n*itemsize contiguous)
            pl.BlockSpec((1, tile_n), lambda j: (0, j)),    # b2 tile
        ],
        out_specs=pl.BlockSpec((P, tile_n), lambda j: (0, j)),  # lane-dense output tile
        compiler_params=pltpu.CompilerParams(
            dimension_semantics=("parallel",),   # independent Dout tiles (v7x: 2 TCs)
            vmem_limit_bytes=vmem_limit,
        ),
    )(e, w1f, b1f, w2s, b2f)


def prefix_encoder_forward(batch_size, params, *, prefix_length, hidden_size,
                           n_layer, n_head, weights_dtype=None,
                           out_dtype=jnp.float32, tile_budget_bytes=None):
    """Mirrors PrefixEncoder.forward(batch_size) with prefix_projection=True.

    Returns a tuple of length n_layer; each element has shape
    [2, batch_size, n_head, prefix_length, head_dim]  (== torch .split(2)).
    """
    head_dim = hidden_size // n_head
    pkv_flat = prefix_mlp(params["embedding"], params["w1"], params["b1"],
                          params["w2"], params["b2"],
                          weights_dtype=weights_dtype, out_dtype=out_dtype,
                          tile_budget_bytes=tile_budget_bytes)          # (P, Dout)
    # Reshape/transpose the SMALL un-broadcast (P, Dout) result first; broadcast
    # over batch last (all batch rows are identical in the torch module, which
    # uses a zero-copy .expand).
    # TODO(synk): downstream consumers that accept an un-broadcast / batch-1
    # prefix can skip the broadcast entirely (torch .expand is a view).
    pkv = pkv_flat.reshape(prefix_length, n_layer * 2, n_head, head_dim)
    pkv = jnp.transpose(pkv, (1, 2, 0, 3))                               # (L*2, nH, P, hd)
    out_shape = (2, batch_size, n_head, prefix_length, head_dim)
    return tuple(jnp.broadcast_to(pkv[2 * l:2 * l + 2, None], out_shape)
                 for l in range(n_layer))


# --------------------------------------------------------------------------- #
# Self-test
# --------------------------------------------------------------------------- #
if __name__ == "__main__":
    # Config A: Dout = n_layer*2*hidden = 256 (multiple of 128) -> tiled path
    # (tile_n=128, grid=(2,)) with NO padding/slicing anywhere.
    prefix_length = 8
    prefix_hidden_size = 32
    hidden_size = 32
    n_layer = 4
    n_head = 4
    batch_size = 2
    head_dim = hidden_size // n_head
    d_out = n_layer * 2 * hidden_size                      # 256

    key = jax.random.PRNGKey(0)
    k_emb, k_w1, k_b1, k_w2, k_b2, k_rest = jax.random.split(key, 6)
    params = {
        "embedding": jax.random.normal(k_emb, (prefix_length, prefix_hidden_size),
                                       jnp.float32) * 0.02,
        "w1": jax.random.normal(k_w1, (prefix_hidden_size, prefix_hidden_size),
                                jnp.float32) * 0.02,
        "b1": jax.random.normal(k_b1, (prefix_hidden_size,), jnp.float32) * 0.02,
        "w2": jax.random.normal(k_w2, (prefix_hidden_size, d_out), jnp.float32) * 0.02,
        "b2": jax.random.normal(k_b2, (d_out,), jnp.float32) * 0.02,
    }

    def reference(p, B, P, Hsz, L, nH):
        hd = Hsz // nH
        flat = jnp.tanh(p["embedding"] @ p["w1"] + p["b1"]) @ p["w2"] + p["b2"]
        full = jnp.broadcast_to(flat[None], (B, P, L * 2 * Hsz))
        full = full.reshape(B, P, L * 2, nH, hd)
        full = jnp.transpose(full, (2, 0, 3, 1, 4))
        return flat, tuple(full[2 * l:2 * l + 2] for l in range(L))

    ref_flat, ref_split = reference(params, batch_size, prefix_length,
                                    hidden_size, n_layer, n_head)

    # Run 1: f32 weight storage -> exact comparison.
    out_f32 = prefix_encoder_forward(batch_size, params,
                                     prefix_length=prefix_length,
                                     hidden_size=hidden_size,
                                     n_layer=n_layer, n_head=n_head)
    out_f32 = jax.block_until_ready(out_f32)
    assert len(out_f32) == n_layer
    for got, want in zip(out_f32, ref_split):
        assert got.shape == (2, batch_size, n_head, prefix_length, head_dim)
        assert got.dtype == jnp.float32
        assert jnp.allclose(got, want, atol=1e-5, rtol=1e-5)

    # Run 2: bf16 *storage* of W2 (cast once at init, not per forward) — the
    # recommended deployment; the dominant HBM stream halves its bytes.
    params_bf16 = dict(params, w2=params["w2"].astype(jnp.bfloat16))
    out_bf16 = prefix_encoder_forward(batch_size, params_bf16,
                                      prefix_length=prefix_length,
                                      hidden_size=hidden_size,
                                      n_layer=n_layer, n_head=n_head)
    out_bf16 = jax.block_until_ready(out_bf16)
    for got, want in zip(out_bf16, ref_split):
        assert got.shape == (2, batch_size, n_head, prefix_length, head_dim)
        assert got.dtype == jnp.float32
        assert jnp.allclose(got, want, atol=1e-2, rtol=2e-2)

    # Direct MLP checks: explicit tiny stream budget (tiling override path) and
    # a bf16 output store (f32 accumulate inside the kernel).
    got_flat = prefix_mlp(params["embedding"], params["w1"], params["b1"],
                          params["w2"], params["b2"], tile_budget_bytes=64 * 1024)
    got_flat = jax.block_until_ready(got_flat)
    assert jnp.allclose(ref_flat, got_flat, atol=1e-5, rtol=1e-5)

    got_flat_bf16out = prefix_mlp(params["embedding"], params["w1"], params["b1"],
                                  params["w2"], params["b2"],
                                  out_dtype=jnp.bfloat16)
    got_flat_bf16out = jax.block_until_ready(got_flat_bf16out)
    assert got_flat_bf16out.dtype == jnp.bfloat16
    assert jnp.allclose(ref_flat, got_flat_bf16out.astype(jnp.float32),
                        atol=1e-2, rtol=2e-2)

    # Config B: hidden_size=40 -> Dout=320 (NOT a multiple of 128) exercises the
    # single full-width block fallback (still no runtime pad / slice).
    hidden_b, n_layer_b, n_head_b = 40, 4, 4
    d_out_b = n_layer_b * 2 * hidden_b                     # 320
    kb = jax.random.split(k_rest, 5)
    params_b = {
        "embedding": jax.random.normal(kb[0], (prefix_length, prefix_hidden_size),
                                       jnp.float32) * 0.02,
        "w1": jax.random.normal(kb[1], (prefix_hidden_size, prefix_hidden_size),
                                jnp.float32) * 0.02,
        "b1": jax.random.normal(kb[2], (prefix_hidden_size,), jnp.float32) * 0.02,
        "w2": jax.random.normal(kb[3], (prefix_hidden_size, d_out_b), jnp.float32) * 0.02,
        "b2": jax.random.normal(kb[4], (d_out_b,), jnp.float32) * 0.02,
    }
    ref_flat_b, ref_split_b = reference(params_b, batch_size, prefix_length,
                                        hidden_b, n_layer_b, n_head_b)
    out_b = prefix_encoder_forward(batch_size, params_b,
                                   prefix_length=prefix_length,
                                   hidden_size=hidden_b,
                                   n_layer=n_layer_b, n_head=n_head_b)
    out_b = jax.block_until_ready(out_b)
    for got, want in zip(out_b, ref_split_b):
        assert got.shape == (2, batch_size, n_head_b, prefix_length,
                             hidden_b // n_head_b)
        assert jnp.allclose(got, want, atol=1e-5, rtol=1e-5)

    print("KERNEL_OK")
</pallas_src>

<mosaic_0001>
module attributes {stable_mosaic.version = 11 : i64} {
  func.func @_prefix_mlp_kernel(%arg0: i32, %arg1: memref<8x32xf32, #tpu.memory_space<vmem>>, %arg2: memref<32x32xf32, #tpu.memory_space<vmem>>, %arg3: memref<1x32xf32, #tpu.memory_space<vmem>>, %arg4: memref<32x128xf32, #tpu.memory_space<vmem>>, %arg5: memref<1x128xf32, #tpu.memory_space<vmem>>, %arg6: memref<8x128xf32, #tpu.memory_space<vmem>>) attributes {dimension_semantics = [#tpu.dimension_semantics<parallel>], iteration_bounds = array<i64: 2>, scalar_prefetch = 0 : i64, scratch_operands = 0 : i64, tpu.core_type = #tpu.core_type<tc>, window_params = [{pipeline_mode = #tpu.pipeline_mode<synchronous>, transform_indices = @transform_0, window_bounds = array<i64: 8, 32>}, {pipeline_mode = #tpu.pipeline_mode<synchronous>, transform_indices = @transform_1, window_bounds = array<i64: 32, 32>}, {pipeline_mode = #tpu.pipeline_mode<synchronous>, transform_indices = @transform_2, window_bounds = array<i64: 1, 32>}, {transform_indices = @transform_3, window_bounds = array<i64: 32, 128>}, {transform_indices = @transform_4, window_bounds = array<i64: 1, 128>}, {transform_indices = @transform_5, window_bounds = array<i64: 8, 128>}]} {
    %c0 = arith.constant 0 : index
    %c0_0 = arith.constant 0 : index
    %0 = vector.load %arg1[%c0, %c0_0] : memref<8x32xf32, #tpu.memory_space<vmem>>, vector<8x32xf32>
    %c0_1 = arith.constant 0 : index
    %c0_2 = arith.constant 0 : index
    %1 = vector.load %arg2[%c0_1, %c0_2] : memref<32x32xf32, #tpu.memory_space<vmem>>, vector<32x32xf32>
    %cst = arith.constant dense<0.000000e+00> : vector<8x32xf32>
    %2 = tpu.matmul %0, %1, %cst {dimension_numbers = #tpu.dot_dimension_numbers<[1], [0], [0], [1], [0, 0, 1, 1], [], []>} : vector<8x32xf32>, vector<32x32xf32>, vector<8x32xf32> -> vector<8x32xf32>
    %c0_3 = arith.constant 0 : index
    %c0_4 = arith.constant 0 : index
    %3 = vector.load %arg3[%c0_3, %c0_4] : memref<1x32xf32, #tpu.memory_space<vmem>>, vector<1x32xf32>
    %4 = vector.broadcast %3 : vector<1x32xf32> to vector<8x32xf32>
    %5 = arith.addf %2, %4 : vector<8x32xf32>
    %6 = math.tanh %5 : vector<8x32xf32>
    %c0_5 = arith.constant 0 : index
    %c0_6 = arith.constant 0 : index
    %7 = vector.load %arg4[%c0_5, %c0_6] : memref<32x128xf32, #tpu.memory_space<vmem>>, vector<32x128xf32>
    %cst_7 = arith.constant dense<0.000000e+00> : vector<8x128xf32>
    %8 = tpu.matmul %6, %7, %cst_7 {dimension_numbers = #tpu.dot_dimension_numbers<[1], [0], [0], [1], [0, 0, 1, 1], [], []>} : vector<8x32xf32>, vector<32x128xf32>, vector<8x128xf32> -> vector<8x128xf32>
    %c0_8 = arith.constant 0 : index
    %c0_9 = arith.constant 0 : index
    %9 = vector.load %arg5[%c0_8, %c0_9] : memref<1x128xf32, #tpu.memory_space<vmem>>, vector<1x128xf32>
    %10 = vector.broadcast %9 : vector<1x128xf32> to vector<8x128xf32>
    %11 = arith.addf %8, %10 : vector<8x128xf32>
    %c0_10 = arith.constant 0 : index
    %c0_11 = arith.constant 0 : index
    %12 = vector.load %arg6[%c0_10, %c0_11] : memref<8x128xf32, #tpu.memory_space<vmem>>, vector<8x128xf32>
    tpu.vector_store %arg6[%c0_10, %c0_11], %11 {strides = array<i32>} : memref<8x128xf32, #tpu.memory_space<vmem>>, vector<8x128xf32>,
    return
  }
  func.func @transform_0(%arg0: i32) -> (i32, i32) {
    %c0_i32 = arith.constant 0 : i32
    %c0_i32_0 = arith.constant 0 : i32
    %c0_i32_1 = arith.constant 0 : i32
    return %c0_i32, %c0_i32_0 : i32, i32
  }
  func.func @transform_1(%arg0: i32) -> (i32, i32) {
    %c0_i32 = arith.constant 0 : i32
    %c0_i32_0 = arith.constant 0 : i32
    %c0_i32_1 = arith.constant 0 : i32
    return %c0_i32, %c0_i32_0 : i32, i32
  }
  func.func @transform_2(%arg0: i32) -> (i32, i32) {
    %c0_i32 = arith.constant 0 : i32
    %c0_i32_0 = arith.constant 0 : i32
    %c0_i32_1 = arith.constant 0 : i32
    return %c0_i32, %c0_i32_0 : i32, i32
  }
  func.func @transform_3(%arg0: i32) -> (i32, i32) {
    %c0_i32 = arith.constant 0 : i32
    %c0_i32_0 = arith.constant 0 : i32
    return %c0_i32, %arg0 : i32, i32
  }
  func.func @transform_4(%arg0: i32) -> (i32, i32) {
    %c0_i32 = arith.constant 0 : i32
    %c0_i32_0 = arith.constant 0 : i32
    return %c0_i32, %arg0 : i32, i32
  }
  func.func @transform_5(%arg0: i32) -> (i32, i32) {
    %c0_i32 = arith.constant 0 : i32
    %c0_i32_0 = arith.constant 0 : i32
    return %c0_i32, %arg0 : i32, i32
  }
}

</mosaic_0001>

<bundles_post_ra>
// kernel: tpu_custom_call.1
= control target key start
LH: loop header
LB: loop body
LE: loop exit
PB: predicated region body
PF: predicated region fallthrough
CT: control target
= control target key end

     0   :  { %s1156_s0 = inlined_call_operand.hbm [shape: f32[8,32], index: 0, kind: input, shape index: {}]   ;;  %s1157_s1 = inlined_call_operand.hbm [shape: f32[32,32], index: 1, kind: input, shape index: {}]   ;;  %s1158_s2 = inlined_call_operand.vmem [shape: f32[1,32], index: 2, kind: input, shape index: {}]   ;;  %s1159_s3 = inlined_call_operand.hbm [shape: f32[32,256], index: 3, kind: input, shape index: {}]   ;;  %s1160_s4 = inlined_call_operand.vmem [shape: f32[1,256], index: 4, kind: input, shape index: {}]   ;;  %s1161_s5 = inlined_call_operand.hbm [shape: f32[8,256], index: 5, kind: output, shape index: {}]  }
   0x1   :  { %1167 = sst [smem:[#allocation14_spill]] %s1156_s0 }
   0x2   :  { %10 = vsyncpa [#allocation3], 0 }
   0x3   :  { %11 = vsyncpa [#allocation6], 0 }
   0x4   :  { %12 = vsyncpa [#allocation4], 0 }
   0x5   :  { %14 = vsyncpa [#allocation4 + $0x1], 0  ;;  %s906_s18 = smov 0   ;;  %s908_s19 = smov 0  }
   0x6   :  { %s910_s20 = smov 0   ;;  %s912_s21 = smov 0  }
   0x7 LB: > { %s927_s22 = sadd.s32 4294967295, %s864_s21   ;;  %s565_s23 = sadd.s32 4294967294, %s864_s21   ;;  %s864_s21 = sphi %s912_s21, %s1192_s21   ;;  %s860_s20 = sphi %s910_s20, %s1191_s20   ;;  %s856_s19 = sphi %s908_s19, %s1190_s19   ;;  %s852_s18 = sphi %s906_s18, %s1189_s18  }
   0x8   : > { %s931_s24 = sadd.s32 1, %s864_s21   ;;  %s90_s25 = sadd.s32 1, %s860_s20 }
   0x9   : > { %s87_s26 = ssub.s32 %s864_s21, %s931_s24  ;;  %p97_p0 = scmp.ne.s32.totalorder %s860_s20, %s856_s19 }
   0xa   : > { %p88_p1 = scmp.eq.s32.totalorder %s87_s26, 0  ;;  %p98_p2 = scmp.eq.s32.totalorder %s864_s21, 0 }
   0xb   : > { %p103_p3 = scmp.ne.s32.totalorder %s856_s19, %s852_s18  ;;  %p1162_p4 = scmp.eq.s32.totalorder %s927_s22, 0 }
   0xc   : > { %s943_s27 = scalar_select %p88_p1, %s860_s20, %s90_s25  }
   0xd   : > { %p945_p5 = por %p98_p2, %p97_p0  ;;  %p951_p6 = por %p1162_p4, %p103_p3 }
   0xe   : > { %1168 = sst [smem:[#allocation13_spill]] %s943_s27  ;;  %p153_p7 = scmp.eq.s32.totalorder %s927_s22, 1 }
   0xf   : > { %s1170_s29 = scalar_select %p951_p6, 1, 0 }
  0x10   : > { %p159_p8 = scmp.eq.s32.totalorder %s565_s23, 1  ;;  %p566_p9 = scmp.ge.s32.totalorder %s864_s21, 1 }
  0x11   : > { %p166_p10 = scmp.lt.s32.totalorder %s864_s21, 3  ;;  %p958_p11 = por %p153_p7, %p97_p0 }
  0x12   : > { %p962_p12 = por %p159_p8, %p103_p3  ;;  %s866_s8 = smov [#allocation2]  }
  0x13   : > { %s1171_s30 = scalar_select %p958_p11, 1, 0 }
  0x14   : > { %s1172_s6 = scalar_select %p962_p12, 1, 0 }
  0x15   : > { %p966_p13 = pnand %p566_p9, %p166_p10  ;;  %s179_s9 = sshll.u32 %s866_s8, 4  ;;  %s180_s9 = int_to_ptr.vmem [resolvable:$true] %s179_s9 }
  0x16   : > { %p658_p4 = scmp.lt.s32.totalorder %s864_s21, 2  ;;  %p1174_p0 = scmp.eq.s32.totalorder %s927_s22, 0 }
  0x17   : > { %s1173_s7 = scalar_select %p966_p13, 1, 0 }
  0x18   : > { %p641_p2 = pneg %p966_p13  ;;  %p982_p3 = pnand %p658_p4, %p945_p5 }
  0x19   : > { %s867_s12 = smov [#allocation5]   ;;  %s1177_s0 = sld [smem:[#allocation14_spill]] }
  0x1a   : > { %p976_p7 = pnand %p641_p2, %p1174_p0  ;;  %s189_s13 = sshll.u32 %s867_s12, 4  ;;  %s986_s13 = int_to_ptr.vmem [resolvable:$true] %s189_s13 }
  0x1b   : > { %s1176_s11 = scalar_select %p982_p3, 1, 0 }
  0x1c   : > { %p706_p9 = pneg %p976_p7 }
  0x1f   : > { %s704_s16 = scalar_lea.hbm %s1177_s0, 128 }
  0x20   : > { %p705_p8 = scmp.ne.s32.totalorder %s1177_s0, %s704_s16  ;;  %p711_p10 = scmp.lt.u32.totalorder %s704_s16, %s1177_s0 }
  0x22   : > { %p707_p4 = pnand %p706_p9, %p705_p8 }
  0x24   : > { %p708_p5 = pneg %p707_p4 }
  0x26   : > { %p713_p2 = pnand %p711_p10, %p708_p5 }
  0x28   : > { %716 = shalt.err (!%p713_p2)
}
  0x29   : > { %s717_s28 = scalar_lea.vmem %s180_s9, 128  ;;  %p725_p11 = scmp.lt.s32.totalorder %s180_s9, %s180_s9 }
  0x2a   : > { %p718_p0 = scmp.ne.s32.totalorder %s180_s9, %s717_s28  ;;  %p726_p6 = scmp.lt.s32.totalorder %s717_s28, %s717_s28 }
  0x2c   : > { %p720_p1 = pnand %p718_p0, %p706_p9  ;;  %p727_p13 = por %p726_p6, %p725_p11 }
  0x2e   : > { %p721_p12 = pneg %p720_p1 }
  0x30   : > { %p728_p3 = pnand %p727_p13, %p721_p12 }
  0x32   : > { %731 = shalt.err (!%p728_p3)
}
  0x33   : > { %644 = dma.hbm_to_vmem [thread:$0]  (!%p976_p7), %s1177_s0, 128, %s180_s9, [#allocation3]  }
  0x34   : > { %s206_s14 = sand.u32 1, %s864_s21   ;;  %s732_s17 = scalar_lea.hbm %s1157_s1, 512 }
  0x35   : > { %p733_p1 = scmp.ne.s32.totalorder %s1157_s1, %s732_s17  ;;  %p739_p12 = scmp.lt.u32.totalorder %s732_s17, %s1157_s1 }
  0x37   : > { %p735_p6 = pnand %p733_p1, %p706_p9 }
  0x39   : > { %p736_p11 = pneg %p735_p6 }
  0x3b   : > { %p741_p13 = pnand %p739_p12, %p736_p11 }
  0x3d   : > { %744 = shalt.err (!%p741_p13)
}
  0x3e   : > { %s745_s9 = scalar_lea.vmem %s986_s13, 512  ;;  %p753_p5 = scmp.lt.s32.totalorder %s986_s13, %s986_s13 }
  0x3f   : > { %p746_p3 = scmp.ne.s32.totalorder %s986_s13, %s745_s9  ;;  %p754_p10 = scmp.lt.s32.totalorder %s745_s9, %s745_s9 }
  0x41   : > { %p748_p8 = pnand %p746_p3, %p706_p9  ;;  %p755_p2 = por %p754_p10, %p753_p5 }
  0x43   : > { %p749_p4 = pneg %p748_p8 }
  0x45   : > { %p756_p0 = pnand %p755_p2, %p749_p4 }
  0x47   : > { %759 = shalt.err (!%p756_p0)
}
  0x48   : > { %s868_s8 = smov 128   ;;  %s869_s12 = smov 8  }
  0x49   : > { %647 = dma.hbm_to_vmem [thread:$0]  (!%p976_p7), %s1157_s1, 512, %s986_s13, [#allocation6], %s868_s8, %s868_s8, %s869_s12  }
  0x4a   : > { %s208_s17 = sand.u32 1, %s860_s20   ;;  %s571_s25 = sshll.u32 %s864_s21, 7 }
  0x4b   : > { %s570_s23 = sshll.u32 %s208_s17, 5  ;;  %s1044_s9 = scalar_lea.hbm %s1159_s3, %s571_s25 }
  0x4c   : > { %s210_s10 = scalar_lea.vmem [#allocation7], %s570_s23  ;;  %s1048_s27 = scalar_lea.sflag [#allocation3], %s206_s14 }
  0x4d   : > { %s216_s0 = sshll.u32 %s210_s10, 4  ;;  %s760_s15 = scalar_lea.hbm %s1044_s9, 512  ;;  %s1046_s0 = int_to_ptr.vmem [resolvable:$true] %s216_s0 }
  0x4e   : > { %p761_p7 = scmp.ne.s32.totalorder %s1044_s9, %s760_s15  ;;  %p1178_p9 = scmp.ne.s32.totalorder %s1176_s11, 0 }
  0x4f   : > { %s765_s17 = scalar_lea.hbm %s1159_s3, 1024  ;;  %p766_p12 = scmp.lt.u32.totalorder %s1044_s9, %s1159_s3 }
  0x50   : > { %p762_p1 = pneg %p1178_p9  ;;  %p767_p13 = scmp.lt.u32.totalorder %s765_s17, %s760_s15 }
  0x51   : > { %p769_p8 = scmp.lt.u32.totalorder %s760_s15, %s1044_s9 }
  0x52   : > { %p763_p6 = pnand %p762_p1, %p761_p7  ;;  %p768_p3 = por %p767_p13, %p766_p12 }
  0x54   : > { %p764_p11 = pneg %p763_p6  ;;  %p770_p4 = por %p769_p8, %p768_p3 }
  0x56   : > { %p771_p5 = pnand %p770_p4, %p764_p11 }
  0x58   : > { %774 = shalt.err (!%p771_p5)
}
  0x59   : > { %s775_s14 = scalar_lea.vmem %s1046_s0, 512  ;;  %s870_s23 = smov [#allocation7]  }
  0x5a   : > { %p776_p10 = scmp.ne.s32.totalorder %s1046_s0, %s775_s14  ;;  %s780_s28 = sshll.u32 %s870_s23, 4  ;;  %s781_s28 = int_to_ptr.vmem [resolvable:$false] %s780_s28 }
  0x5b   : > { %s782_s10 = scalar_lea.vmem %s781_s28, 1024  ;;  %p783_p7 = scmp.lt.s32.totalorder %s1046_s0, %s781_s28 }
  0x5c   : > { %p778_p2 = pnand %p776_p10, %p762_p1  ;;  %p784_p6 = scmp.lt.s32.totalorder %s782_s10, %s775_s14 }
  0x5e   : > { %p779_p0 = pneg %p778_p2  ;;  %p785_p12 = por %p784_p6, %p783_p7 }
  0x60   : > { %p786_p13 = pnand %p785_p12, %p779_p0 }
  0x62   : > { %789 = shalt.err (!%p786_p13)
}
  0x63   : > { %s871_s15 = smov 256   ;;  %p1179_p1 = scmp.ne.s32.totalorder %s1173_s7, 0 }
  0x64   : > { %651 = dma.hbm_to_vmem [thread:$0]  (!%p1178_p9), %s1044_s9, 512, %s1046_s0, %s1048_s27, %s871_s15, %s868_s8, %s869_s12  }
  0x65   : > { %234 = sbr.rel (%p1179_p1) target bundleno = 581 (0x245), region = 40  ;;  %p1180_p11 = scmp.eq.s32.totalorder (!%p1179_p1), %s927_s22, 0 }
  0x6c   : > { %835 = dma.done.wait (%p1180_p11), [#allocation3], 128   ;;  %p1181_p3 = pmov %p1180_p11 }
  0x6e   : > { %837 = vsyncadd (%p1181_p3), [#allocation3], 4294967168  ;;  %p1182_p8 = pmov %p1181_p3 }
  0x6f   : > { %p1183_p4 = pmov %p1181_p3 }
  0x70   : > { %839 = dma.done.wait (%p1182_p8), [#allocation6], 512  }
  0x71   : > { %841 = vsyncadd (%p1183_p4), [#allocation6], 4294966784  ;;  %s244_s11 = sand.u32 1, %s927_s22   ;;  %s1090_s0 = sand.u32 1, %s856_s19  }
  0x72   : > { %s575_s27 = sshll.u32 %s1090_s0, 5  ;;  %s245_s7 = scalar_lea.sflag [#allocation3], %s244_s11 }
  0x73   : > { %s248_s8 = scalar_lea.vmem [#allocation7], %s575_s27  ;;  %p1184_p9 = scmp.ne.s32.totalorder %s1170_s29, 0 }
  0x75   : > { %843 = dma.done.wait (%p1184_p9), %s245_s7, 512  }
  0x76   : > { %845 = vsyncadd (%p1184_p9), %s245_s7, 4294966784  ;;  %v872_v0 = vmov 0.0|0.0   ;;  %vm873_vm0 = vmmov 0   ;;  %v874_v1 = vmov 0.0   ;;  %v282_v2 = vld [vmem:[#allocation5] sm:$0xff]  ;;  %v283_v3 = vld [vmem:[#allocation5 + $0x8] sm:$0xff] }
  0x77   : > { %617 = vmatprep.subr.bf16.mxu0 %v872_v0  ;;  %603 = vmatprep.mubr.msk.f32.mxu0 %vm873_vm0, %v874_v1  ;;  %v284_v4 = vld [vmem:[#allocation5 + $0x10] sm:$0xff]  ;;  %v618_v5 = vpack.c.bf16 %v283_v3, %v282_v2  ;;  %v285_v6 = vld [vmem:[#allocation5 + $0x18] sm:$0xff]  ;;  %vm293_vm1 = vcmask 261120   ;;  %v368_v9 = vld [vmem:[%s248_s8] sm:$0xff]  ;;  %p278_p5 = scmp.lt.s32.totalorder %s927_s22, 1  ;;  %s576_s13 = sshll.u32 %s1090_s0, 3 }
  0x78   : > { %623 = vmatprep.subr.bf16.mxu1 %v872_v0  ;;  %614 = vmatprep.mubr.msk.f32.mxu1 %vm873_vm0, %v874_v1  ;;  %v621_v7 = vpack.c.bf16 %v285_v6, %v284_v4  ;;  %v281_v8 = vld [vmem:[#allocation2] sm:$0xff]  ;;  %v369_v10 = vld [vmem:[%s248_s8 + $0x8] sm:$0xff]  ;;  %v370_v11 = vld [vmem:[%s248_s8 + $0x10] sm:$0xff]  ;;  %s582_s26 = sshll.u32 %s927_s22, 7  ;;  %s277_s14 = scalar_lea.vmem [#allocation8], %s576_s13 }
  0x79   : > { %619 = vmatpush3.bf16.msra.mxu0 %v618_v5  ;;  %v624_v12 = vpack.c.bf16 %v369_v10, %v368_v9  ;;  %v371_v13 = vld [vmem:[%s248_s8 + $0x18] sm:$0xff]  ;;  %s279_s9 = scalar_select %p278_p5, %s927_s22, 1 }
  0x7a   : > { %620 = vmatprep.subr.bf16.mxu0 %v872_v0  ;;  %v627_v14 = vpack.c.bf16 %v371_v13, %v370_v11  ;;  %v577_v15 = vld [vmem:[%s1158_s2] ss:$0 sm:$0xff]  ;;  %s467_s23 = sshll.u32 %s277_s14, 4  ;;  %s1112_s15 = scalar_lea.hbm %s1161_s5, %s582_s26  ;;  %s1114_s23 = int_to_ptr.vmem [resolvable:$true] %s467_s23 }
  0x7b   : > { %625 = vmatpush3.bf16.msra.mxu1 %v624_v12  ;;  %s280_s25 = scalar_lea.vmem %s1160_s4, %s279_s9  ;;  %s454_s11 = scalar_lea.sflag [#allocation4], %s1090_s0 }
  0x7c   : > { %626 = vmatprep.subr.bf16.mxu1 %v872_v0  ;;  %v579_v20 = vld [vmem:[%s280_s25] ss:$0 sm:$0xff]  ;;  %s790_s27 = scalar_lea.vmem %s1114_s23, 128  ;;  %p1185_p2 = scmp.ne.s32.totalorder %s1171_s30, 0 }
  0x7d   : > { %622 = vmatpush3.bf16.msra.mxu0 %v621_v7  ;;  %p791_p10 = scmp.ne.s32.totalorder %s1114_s23, %s790_s27  ;;  %s875_s22 = smov [#allocation8]  }
  0x7e   : > { %s794_s7 = sshll.u32 %s875_s22, 4  ;;  %s795_s7 = int_to_ptr.vmem [resolvable:$false] %s794_s7 }
  0x7f   : > { %628 = vmatpush3.bf16.msra.mxu1 %v627_v14  ;;  %p792_p0 = pnand %p791_p10, %p1185_p2  ;;  %s796_s8 = scalar_lea.vmem %s795_s7, 256 }
  0x80   : > { %604 = vmatmul.mubr.msk.f32.vlgmr.msra.gmra.mrb[0].mxu0 %vm293_vm1, %v281_v8  ;;  %p797_p6 = scmp.lt.s32.totalorder %s1114_s23, %s795_s7  ;;  %p798_p12 = scmp.lt.s32.totalorder %s796_s8, %s790_s27 }
  0x81   : > { %p793_p7 = pneg %p792_p0 }
  0x82   : > { %p799_p13 = por %p798_p12, %p797_p6 }
  0x84   : > { %p800_p1 = pnand %p799_p13, %p793_p7 }
 0x153   : > { %v363_v16 = vpop.f32.mrb[0].mxu0 }
 0x154   : > { %v364_v17 = vadd.f32 %v577_v15, %v363_v16  ;;  %v605_v18 = vpop.f32.mrb[1].mxu0 }
 0x156   : > { %702 = vtanh.f32 %v364_v17 }
 0x160   : > { %v703_v19 = vpop.eup %702 }
 0x161   : > { %615 = vmatmul.mubr.msk.f32.vlgmr.msra.gmra.mrb[0].mxu1 %vm293_vm1, %v703_v19 }
 0x234   : > { %v448_v21 = vpop.f32.mrb[0].mxu1 }
 0x235   : > { %v449_v22 = vadd.f32 %v579_v20, %v448_v21  ;;  %v616_v23 = vpop.f32.mrb[1].mxu1 }
 0x237   : > { %452 = vst [vmem:[%s277_s14] sm:$0xff] %v449_v22 }
 0x238   : > { %803 = shalt.err (!%p800_p1)
}
 0x239   : > { %s804_s0 = scalar_lea.hbm %s1112_s15, 128  ;;  %s808_s9 = scalar_lea.hbm %s1161_s5, 256 }
 0x23a   : > { %p805_p11 = scmp.ne.s32.totalorder %s1112_s15, %s804_s0  ;;  %p809_p4 = scmp.lt.u32.totalorder %s1112_s15, %s1161_s5 }
 0x23b   : > { %p810_p9 = scmp.lt.u32.totalorder %s808_s9, %s804_s0  ;;  %p812_p10 = scmp.lt.u32.totalorder %s804_s0, %s1112_s15 }
 0x23c   : > { %p806_p3 = pnand %p805_p11, %p1185_p2 }
 0x23d   : > { %p811_p5 = por %p810_p9, %p809_p4 }
 0x23e   : > { %p807_p8 = pneg %p806_p3 }
 0x23f   : > { %p813_p0 = por %p812_p10, %p811_p5 }
 0x241   : > { %p814_p7 = pnand %p813_p0, %p807_p8 }
 0x243   : > { %817 = shalt.err (!%p814_p7)
}
 0x244   : > { %639 = dma.vmem_to_hbm [thread:$0]  (%p1185_p2), %s1114_s23, 128, %s1112_s15, %s454_s11  }
 0x245 PF: > { %s479_s17 = sand.u32 1, %s852_s18   ;;  %p1186_p6 = scmp.ne.s32.totalorder %s1172_s6, 0 }
 0x246   : > { %p1187_p12 = scmp.ge.s32.totalorder %s864_s21, 2  ;;  %s480_s25 = scalar_lea.sflag [#allocation4], %s479_s17 }
 0x248   : > { %p653_p13 = pnand %p1187_p12, %p1186_p6 }
 0x24a   : > { %847 = dma.done.wait (!%p653_p13), %s480_s25, 128  }
 0x24b   : > { %849 = vsyncadd (!%p653_p13), %s480_s25, 4294967168  ;;  %s1188_s26 = sld [smem:[#allocation13_spill]]  ;;  %p17_p1 = scmp.ge.s32.totalorder %s931_s24, 4  }
 0x24c   : > { %s1189_s18 = smov %s856_s19  ;;  %s1190_s19 = smov %s860_s20 }
 0x24d   : > { %s1192_s21 = smov %s931_s24  ;;  %19 = sbr.rel (!%p17_p1) target bundleno = 7 (0x7), region = 95 }
 0x251   : > { %s1191_s20 = smov %s1188_s26 }
 0x254   :  { %485 = vsyncpa [#allocation3], 1 }
 0x255   :  { %487 = vsyncpa [#allocation3 + $0x1], 1 }
 0x256   :  { %488 = vsyncpa [#allocation6], 1 }
 0x257   :  { %489 = vsyncpa [#allocation4], 1 }
 0x258   :  { %491 = vsyncpa [#allocation4 + $0x1], 1 }

</bundles_post_ra>
